<compile_context>
chip_gen: v5e
topology: v5e:2x2
jax: 0.10.0
libtpu: 0.0.40
codegen_flags: <defaults>
</compile_context>

<pallas_src>
import functools

import jax
import jax.numpy as jnp
from jax.experimental import pallas as pl
from jax.experimental.pallas import tpu as pltpu


def _round_up(x: int, m: int) -> int:
    return (x + m - 1) // m * m


def rbm_v_to_h_kernel(x_ref, w_ref, hb_ref, u_ref, h_ref, s_ref, acc_ref):
    """One (TM, TN) output tile; K (n_visible) is the innermost reduction axis."""
    k = pl.program_id(2)

    @pl.when(k == 0)
    def _init():
        acc_ref[...] = jnp.zeros_like(acc_ref)

    # bf16 x bf16 -> f32 accumulation on the MXU.
    acc_ref[...] += jnp.dot(
        x_ref[...], w_ref[...], preferred_element_type=jnp.float32
    )

    @pl.when(k == pl.num_programs(2) - 1)
    def _finalize():
        h = jax.nn.sigmoid(acc_ref[...] + hb_ref[...])          # (TM, TN)
        h_ref[...] = h.astype(h_ref.dtype)
        # Bernoulli(h): sample = 1 iff uniform u < h.
        s_ref[...] = (u_ref[...] < h).astype(s_ref.dtype)


def rbm_v_to_h(x, W, hb, noise, *, tm_max=256, tn_max=512, tk_max=512):
    """Pallas implementation of RBM.forward == v_to_h.

    Args:
      x:     (B, n_visible) visible probabilities / data.
      W:     (n_visible, n_hidden) weights.
      hb:    (n_hidden,) hidden bias.
      noise: (B, n_hidden) uniform [0,1) randoms used for Bernoulli sampling.
    Returns:
      (h, sample_h): both (B, n_hidden) float32.
    """
    B, nv = x.shape
    nh = W.shape[1]

    # Tile sizes: lane-dense (multiples of 128) on N/K, >=16 sublanes on M for
    # bf16 packing, capped so double-buffered tiles stay small vs v7x VMEM.
    TM = min(tm_max, _round_up(B, 16))
    TN = min(tn_max, _round_up(nh, 128))
    TK = min(tk_max, _round_up(nv, 128))
    Mp = _round_up(B, TM)
    Np = _round_up(nh, TN)
    Kp = _round_up(nv, TK)

    # Zero-pad and cast operands: bf16 halves HBM traffic for W/X and doubles
    # MXU throughput; accumulation stays f32 in-kernel.
    xb = jnp.zeros((Mp, Kp), jnp.bfloat16).at[:B, :nv].set(x.astype(jnp.bfloat16))
    wb = jnp.zeros((Kp, Np), jnp.bfloat16).at[:nv, :nh].set(W.astype(jnp.bfloat16))
    hbp = jnp.zeros((1, Np), jnp.float32).at[0, :nh].set(hb.astype(jnp.float32))
    # Pad noise with 1.0 so padded columns sample to 0 (they are sliced off anyway).
    up = jnp.ones((Mp, Np), jnp.float32).at[:B, :nh].set(noise.astype(jnp.float32))

    grid = (Mp // TM, Np // TN, Kp // TK)

    grid_spec = pltpu.PrefetchScalarGridSpec(
        num_scalar_prefetch=0,
        grid=grid,
        in_specs=[
            pl.BlockSpec((TM, TK), lambda i, j, k: (i, k)),   # X tile
            pl.BlockSpec((TK, TN), lambda i, j, k: (k, j)),   # W tile
            pl.BlockSpec((1, TN), lambda i, j, k: (0, j)),    # hb tile
            pl.BlockSpec((TM, TN), lambda i, j, k: (i, j)),   # uniform noise tile
        ],
        out_specs=[
            pl.BlockSpec((TM, TN), lambda i, j, k: (i, j)),   # h
            pl.BlockSpec((TM, TN), lambda i, j, k: (i, j)),   # bernoulli(h)
        ],
        scratch_shapes=[pltpu.VMEM((TM, TN), jnp.float32)],   # f32 accumulator
    )

    cost = pl.CostEstimate(
        flops=2 * Mp * Np * Kp,
        transcendentals=Mp * Np,
        bytes_accessed=(Mp * Kp * 2 + Kp * Np * 2 + Np * 4
                        + Mp * Np * 4 + 2 * Mp * Np * 4),
    )

    h, s = pl.pallas_call(
        rbm_v_to_h_kernel,
        out_shape=(
            jax.ShapeDtypeStruct((Mp, Np), jnp.float32),
            jax.ShapeDtypeStruct((Mp, Np), jnp.float32),
        ),
        grid_spec=grid_spec,
        compiler_params=pltpu.CompilerParams(
            dimension_semantics=("parallel", "parallel", "arbitrary")
        ),
        cost_estimate=cost,
    )(xb, wb, hbp, up)

    return h[:B, :nh], s[:B, :nh]


def rbm_forward(x, W, hb, key):
    """RBM.forward(X): returns (h, bernoulli(h)); randomness from `key`."""
    noise = jax.random.uniform(key, (x.shape[0], W.shape[1]), dtype=jnp.float32)
    h, s = rbm_v_to_h(x, W, hb, noise)
    return h, s, noise


def make_rbm_params(n_visible, n_hidden, key):
    """Parameter init matching RBM.__init__ (W ~ N(0, 4*sqrt(6/(nv+nh))), zero biases)."""
    std = 4.0 * jnp.sqrt(6.0 / (n_visible + n_hidden))
    W = std * jax.random.normal(key, (n_visible, n_hidden), dtype=jnp.float32)
    vb = jnp.zeros((n_visible,), jnp.float32)   # unused by forward, kept for parity
    hb = jnp.zeros((n_hidden,), jnp.float32)
    return W, vb, hb


if __name__ == "__main__":
    key = jax.random.PRNGKey(0)
    k_w, k_x, k_noise = jax.random.split(key, 3)

    # Small MNIST-style RBM shapes: (batch, n_visible) -> (batch, n_hidden).
    batch, n_visible, n_hidden = 32, 784, 256

    W, vb, hb = make_rbm_params(n_visible, n_hidden, k_w)
    X = jax.random.uniform(k_x, (batch, n_visible), dtype=jnp.float32)
    U = jax.random.uniform(k_noise, (batch, n_hidden), dtype=jnp.float32)

    # Default (performance-oriented) tiling: grid = (1, 1, 2) at these shapes.
    h, sample_h = rbm_v_to_h(X, W, hb, U)
    # Force a multi-tile grid on all three axes to exercise the full pipeline.
    h2, sample_h2 = rbm_v_to_h(X, W, hb, U, tm_max=16, tn_max=128, tk_max=128)
    jax.block_until_ready((h, sample_h, h2, sample_h2))

    # Reference for the deterministic part (f32).
    h_ref = jax.nn.sigmoid(X @ W + hb)

    assert h.shape == (batch, n_hidden) and sample_h.shape == (batch, n_hidden)
    # bf16 operands -> modest tolerance vs the f32 reference.
    assert jnp.allclose(h, h_ref, atol=3e-2), "hidden probabilities mismatch"
    assert jnp.allclose(h2, h_ref, atol=3e-2), "hidden probabilities mismatch (tiled)"
    assert jnp.allclose(h, h2, atol=1e-3), "tilings disagree"
    assert bool(jnp.all((sample_h == 0.0) | (sample_h == 1.0))), "sample not binary"
    # Bernoulli threshold consistency against the exact same noise / kernel h.
    assert bool(jnp.all(sample_h == (U < h).astype(jnp.float32))), "sampling mismatch"
    assert bool(jnp.all(sample_h2 == (U < h2).astype(jnp.float32))), "sampling mismatch (tiled)"

    print("KERNEL_OK")
</pallas_src>

<mosaic_0001>
module attributes {stable_mosaic.version = 11 : i64} {
  func.func @rbm_v_to_h_kernel(%arg0: i32, %arg1: i32, %arg2: i32, %arg3: memref<32x512xbf16, #tpu.memory_space<vmem>>, %arg4: memref<512x256xbf16, #tpu.memory_space<vmem>>, %arg5: memref<1x256xf32, #tpu.memory_space<vmem>>, %arg6: memref<32x256xf32, #tpu.memory_space<vmem>>, %arg7: memref<32x256xf32, #tpu.memory_space<vmem>>, %arg8: memref<32x256xf32, #tpu.memory_space<vmem>>, %arg9: memref<32x256xf32, #tpu.memory_space<vmem>>) attributes {dimension_semantics = [#tpu.dimension_semantics<parallel>, #tpu.dimension_semantics<parallel>, #tpu.dimension_semantics<arbitrary>], iteration_bounds = array<i64: 1, 1, 2>, scalar_prefetch = 0 : i64, scratch_operands = 1 : i64, tpu.core_type = #tpu.core_type<tc>, window_params = [{transform_indices = @transform_0, window_bounds = array<i64: 32, 512>}, {transform_indices = @transform_1, window_bounds = array<i64: 512, 256>}, {transform_indices = @transform_2, window_bounds = array<i64: 1, 256>}, {transform_indices = @transform_3, window_bounds = array<i64: 32, 256>}, {transform_indices = @transform_4, window_bounds = array<i64: 32, 256>}, {transform_indices = @transform_5, window_bounds = array<i64: 32, 256>}]} {
    %c0_i32 = arith.constant 0 : i32
    %0 = arith.cmpi eq, %arg2, %c0_i32 : i32
    %1 = arith.extui %0 : i1 to i32
    %c0_i32_0 = arith.constant 0 : i32
    %2 = arith.cmpi ne, %1, %c0_i32_0 : i32
    scf.if %2 {
      %cst_9 = arith.constant 0.000000e+00 : f32
      %12 = vector.broadcast %cst_9 : f32 to vector<32x256xf32>
      %c0_10 = arith.constant 0 : index
      %c0_11 = arith.constant 0 : index
      %13 = vector.load %arg9[%c0_10, %c0_11] : memref<32x256xf32, #tpu.memory_space<vmem>>, vector<32x256xf32>
      tpu.vector_store %arg9[%c0_10, %c0_11], %12 {strides = array<i32>} : memref<32x256xf32, #tpu.memory_space<vmem>>, vector<32x256xf32>,
    } else {
    }
    %c0 = arith.constant 0 : index
    %c0_1 = arith.constant 0 : index
    %3 = vector.load %arg9[%c0, %c0_1] : memref<32x256xf32, #tpu.memory_space<vmem>>, vector<32x256xf32>
    %c0_2 = arith.constant 0 : index
    %c0_3 = arith.constant 0 : index
    %4 = vector.load %arg3[%c0_2, %c0_3] : memref<32x512xbf16, #tpu.memory_space<vmem>>, vector<32x512xbf16>
    %c0_4 = arith.constant 0 : index
    %c0_5 = arith.constant 0 : index
    %5 = vector.load %arg4[%c0_4, %c0_5] : memref<512x256xbf16, #tpu.memory_space<vmem>>, vector<512x256xbf16>
    %cst = arith.constant dense<0.000000e+00> : vector<32x256xf32>
    %6 = tpu.matmul %4, %5, %cst {dimension_numbers = #tpu.dot_dimension_numbers<[1], [0], [0], [1], [0, 0, 1, 1], [], []>} : vector<32x512xbf16>, vector<512x256xbf16>, vector<32x256xf32> -> vector<32x256xf32>
    %7 = arith.addf %3, %6 : vector<32x256xf32>
    %c0_6 = arith.constant 0 : index
    %c0_7 = arith.constant 0 : index
    %8 = vector.load %arg9[%c0_6, %c0_7] : memref<32x256xf32, #tpu.memory_space<vmem>>, vector<32x256xf32>
    tpu.vector_store %arg9[%c0_6, %c0_7], %7 {strides = array<i32>} : memref<32x256xf32, #tpu.memory_space<vmem>>, vector<32x256xf32>,
    %c1_i32 = arith.constant 1 : i32
    %9 = arith.cmpi eq, %arg2, %c1_i32 : i32
    %10 = arith.extui %9 : i1 to i32
    %c0_i32_8 = arith.constant 0 : i32
    %11 = arith.cmpi ne, %10, %c0_i32_8 : i32
    scf.if %11 {
      %c0_9 = arith.constant 0 : index
      %c0_10 = arith.constant 0 : index
      %12 = vector.load %arg9[%c0_9, %c0_10] : memref<32x256xf32, #tpu.memory_space<vmem>>, vector<32x256xf32>
      %c0_11 = arith.constant 0 : index
      %c0_12 = arith.constant 0 : index
      %13 = vector.load %arg5[%c0_11, %c0_12] : memref<1x256xf32, #tpu.memory_space<vmem>>, vector<1x256xf32>
      %14 = vector.broadcast %13 : vector<1x256xf32> to vector<32x256xf32>
      %15 = arith.addf %12, %14 : vector<32x256xf32>
      %16 = arith.negf %15 : vector<32x256xf32>
      %17 = math.exp %16 : vector<32x256xf32>
      %cst_13 = arith.constant 1.000000e+00 : f32
      %18 = vector.broadcast %cst_13 : f32 to vector<32x256xf32>
      %19 = arith.addf %18, %17 : vector<32x256xf32>
      %20 = arith.divf %18, %19 : vector<32x256xf32>
      %c0_14 = arith.constant 0 : index
      %c0_15 = arith.constant 0 : index
      %21 = vector.load %arg7[%c0_14, %c0_15] : memref<32x256xf32, #tpu.memory_space<vmem>>, vector<32x256xf32>
      tpu.vector_store %arg7[%c0_14, %c0_15], %20 {strides = array<i32>} : memref<32x256xf32, #tpu.memory_space<vmem>>, vector<32x256xf32>,
      %c0_16 = arith.constant 0 : index
      %c0_17 = arith.constant 0 : index
      %22 = vector.load %arg6[%c0_16, %c0_17] : memref<32x256xf32, #tpu.memory_space<vmem>>, vector<32x256xf32>
      %23 = arith.cmpf olt, %22, %20 : vector<32x256xf32>
      %24 = arith.extui %23 : vector<32x256xi1> to vector<32x256xi32>
      %25 = arith.sitofp %24 : vector<32x256xi32> to vector<32x256xf32>
      %c0_18 = arith.constant 0 : index
      %c0_19 = arith.constant 0 : index
      %26 = vector.load %arg8[%c0_18, %c0_19] : memref<32x256xf32, #tpu.memory_space<vmem>>, vector<32x256xf32>
      tpu.vector_store %arg8[%c0_18, %c0_19], %25 {strides = array<i32>} : memref<32x256xf32, #tpu.memory_space<vmem>>, vector<32x256xf32>,
    } else {
    }
    return
  }
  func.func @transform_0(%arg0: i32, %arg1: i32, %arg2: i32) -> (i32, i32) {
    %c0_i32 = arith.constant 0 : i32
    return %arg0, %arg2 : i32, i32
  }
  func.func @transform_1(%arg0: i32, %arg1: i32, %arg2: i32) -> (i32, i32) {
    %c0_i32 = arith.constant 0 : i32
    return %arg2, %arg1 : i32, i32
  }
  func.func @transform_2(%arg0: i32, %arg1: i32, %arg2: i32) -> (i32, i32) {
    %c0_i32 = arith.constant 0 : i32
    %c0_i32_0 = arith.constant 0 : i32
    return %c0_i32, %arg1 : i32, i32
  }
  func.func @transform_3(%arg0: i32, %arg1: i32, %arg2: i32) -> (i32, i32) {
    %c0_i32 = arith.constant 0 : i32
    return %arg0, %arg1 : i32, i32
  }
  func.func @transform_4(%arg0: i32, %arg1: i32, %arg2: i32) -> (i32, i32) {
    %c0_i32 = arith.constant 0 : i32
    return %arg0, %arg1 : i32, i32
  }
  func.func @transform_5(%arg0: i32, %arg1: i32, %arg2: i32) -> (i32, i32) {
    %c0_i32 = arith.constant 0 : i32
    return %arg0, %arg1 : i32, i32
  }
}

</mosaic_0001>

<bundles_post_ra>
// kernel: tpu_custom_call.1
= control target key start
LH: loop header
LB: loop body
LE: loop exit
PB: predicated region body
PF: predicated region fallthrough
CT: control target
= control target key end

     0   :  { %s2692_s0 = inlined_call_operand.hbm [shape: bf16[32,1024], index: 0, kind: input, shape index: {}]   ;;  %s2693_s1 = inlined_call_operand.hbm [shape: bf16[1024,256], index: 1, kind: input, shape index: {}]   ;;  %s2694_s2 = inlined_call_operand.hbm [shape: f32[1,256], index: 2, kind: input, shape index: {}]   ;;  %s2695_s3 = inlined_call_operand.hbm [shape: f32[32,256], index: 3, kind: input, shape index: {}]   ;;  %s2696_s4 = inlined_call_operand.hbm [shape: f32[32,256], index: 4, kind: output, shape index: {0}]   ;;  %s2697_s5 = inlined_call_operand.hbm [shape: f32[32,256], index: 5, kind: output, shape index: {1}]  }
   0x1   :  { %2699 = sst [smem:[#allocation21_spill]] %s2692_s0 }
   0x2   :  { %2700 = sst [smem:[#allocation22_spill]] %s2694_s2 }
   0x3   :  { %2701 = sst [smem:[#allocation23_spill]] %s2695_s3 }
   0x4   :  { %2702 = sst [smem:[#allocation24_spill]] %s2697_s5 }
   0x5   :  { %11 = vsyncpa [#allocation4], 0 }
   0x6   :  { %13 = vsyncpa [#allocation4 + $0x1], 0 }
   0x7   :  { %14 = vsyncpa [#allocation7], 0 }
   0x8   :  { %16 = vsyncpa [#allocation7 + $0x1], 0 }
   0x9   :  { %17 = vsyncpa [#allocation10], 0 }
   0xa   :  { %18 = vsyncpa [#allocation5], 0 }
   0xb   :  { %19 = vsyncpa [#allocation13], 0  ;;  %s2232_s18 = smov 0   ;;  %s2234_s19 = smov 0  }
   0xc   :  { %s2236_s20 = smov 0   ;;  %s2238_s21 = smov 0  }
   0xd   :  { %s2240_s22 = smov 0   ;;  %s2242_s23 = smov 0  }
   0xe LB: > { %s2261_s24 = sadd.s32 4294967295, %s2187_s23   ;;  %s53_s25 = sadd.s32 1, %s2175_s20  ;;  %s2187_s23 = sphi %s2242_s23, %s25_s23   ;;  %s2183_s22 = sphi %s2240_s22, %s2737_s22   ;;  %s2179_s21 = sphi %s2238_s21, %s2736_s21   ;;  %s2175_s20 = sphi %s2236_s20, %s2735_s20   ;;  %s2171_s19 = sphi %s2234_s19, %s2734_s19   ;;  %s2167_s18 = sphi %s2232_s18, %s2733_s18  }
   0xf   : > { %p60_p0 = scmp.ne.s32.totalorder %s2175_s20, %s2171_s19  ;;  %p61_p1 = scmp.eq.s32.totalorder %s2187_s23, 0 }
  0x10   : > { %p66_p2 = scmp.ne.s32.totalorder %s2171_s19, %s2167_s18  ;;  %p67_p3 = scmp.eq.s32.totalorder %s2261_s24, 0 }
  0x11   : > { %p2269_p4 = por %p61_p1, %p60_p0  ;;  %p1402_p5 = scmp.ge.s32.totalorder %s2187_s23, 1 }
  0x12   : > { %p2276_p6 = por %p67_p3, %p66_p2  ;;  %p215_p7 = scmp.lt.s32.totalorder %s2187_s23, 3 }
  0x13   : > { %s2705_s2 = sld [smem:[#allocation22_spill]]  ;;  %s2189_s7 = smov [#allocation8]  }
  0x14   : > { %p2284_p8 = pnand %p1402_p5, %p215_p7  ;;  %s231_s8 = sshll.u32 %s2189_s7, 4  ;;  %s232_s8 = int_to_ptr.vmem [resolvable:$true] %s231_s8 }
  0x15   : > { %p1841_p10 = scmp.lt.s32.totalorder %s2187_s23, 2  ;;  %s2707_s3 = sld [smem:[#allocation23_spill]] }
  0x16   : > { %p1825_p9 = pneg %p2284_p8  ;;  %s2190_s13 = smov [#allocation9]  }
  0x17   : > { %p2298_p12 = pnand %p1841_p10, %p2269_p4  ;;  %s248_s14 = sshll.u32 %s2190_s13, 4  ;;  %s249_s14 = int_to_ptr.vmem [resolvable:$true] %s248_s14 }
  0x18   : > { %p1826_p11 = pnand %p1825_p9, %p67_p3  ;;  %s2191_s15 = smov 256  }
  0x19   : > { %s229_s30 = sshll.u32 %s2705_s2, 4  ;;  %s2192_s16 = smov 16   ;;  %s230_s30 = int_to_ptr.hbm [resolvable:$true] %s229_s30 }
  0x1a   : > { %1828 = dma.hbm_to_vmem [thread:$0]  (!%p1826_p11), %s230_s30, 32, %s232_s8, [#allocation7]  }
  0x1b   : > { %s246_s11 = sshll.u32 %s2707_s3, 4  ;;  %s262_s17 = sand.u32 1, %s2175_s20   ;;  %s247_s11 = int_to_ptr.hbm [resolvable:$true] %s246_s11 }
  0x1c   : > { %1831 = dma.hbm_to_vmem [thread:$0]  (!%p1826_p11), %s247_s11, 1024, %s249_s14, [#allocation10], %s2191_s15, %s2191_s15, %s2192_s16  }
  0x1d   : > { %s37_s18 = sadd.s32 1, %s2183_s22  ;;  %s1406_s26 = sshll.u32 %s262_s17, 6 }
  0x1e   : > { %p38_p13 = scmp.ge.s32.totalorder %s37_s18, 2  ;;  %s1730_s28 = sshll.u32 %s2183_s22, 4 }
  0x1f   : > { %s2710_s0 = sld [smem:[#allocation21_spill]]  ;;  %s266_s8 = scalar_lea.vmem [#allocation3], %s1406_s26 }
  0x20   : > { %s2739_s18 = smov (%p38_p13, %s37_s18), 0  ;;  %s277_s9 = sshll.u32 %s266_s8, 4  ;;  %s278_s9 = int_to_ptr.vmem [resolvable:$true] %s277_s9 }
  0x21   : > { %2709 = sst [smem:[#allocation20_spill]] %s2739_s18  ;;  %s49_s10 = ssub.s32 %s2183_s22, %s2739_s18 }
  0x22   : > { %p51_p0 = scmp.eq.s32.totalorder %s49_s10, 0  ;;  %s263_s14 = scalar_lea.sflag [#allocation4], %s262_s17 }
  0x23   : > { %s2193_s2 = smov 512   ;;  %s287_s3 = sand.u32 1, %s2187_s23  }
  0x24   : > { %s2315_s11 = scalar_select %p51_p0, %s2175_s20, %s53_s25  }
  0x25   : > { %s274_s7 = scalar_lea.hbm %s2710_s0, %s1730_s28  ;;  %s1409_s5 = sshll.u32 %s262_s17, 9 }
  0x26   : > { %s275_s13 = sshll.u32 %s274_s7, 4  ;;  %s1732_s29 = sshll.u32 %s2183_s22, 9  ;;  %s276_s13 = int_to_ptr.hbm [resolvable:$true] %s275_s13 }
  0x27   : > { %1835 = dma.hbm_to_vmem [thread:$0]  (!%p2298_p12), %s276_s13, 1024, %s278_s9, %s263_s14, %s2193_s2, %s2191_s15, %s2192_s16  }
  0x28   : > { %s291_s30 = scalar_lea.vmem [#allocation6], %s1409_s5  ;;  %s299_s7 = scalar_lea.hbm %s2693_s1, %s1732_s29 }
  0x29   : > { %s302_s28 = sshll.u32 %s291_s30, 4  ;;  %s300_s10 = sshll.u32 %s299_s7, 4  ;;  %s303_s28 = int_to_ptr.vmem [resolvable:$true] %s302_s28  ;;  %s301_s10 = int_to_ptr.hbm [resolvable:$true] %s300_s10 }
  0x2a   : > { %s288_s0 = scalar_lea.sflag [#allocation7], %s287_s3  ;;  %s2194_s25 = smov 128  }
  0x2b   : > { %s2195_s18 = smov 8   ;;  %314 = sbr.rel (%p2284_p8) target bundleno = 374 (0x176), region = 36 }
  0x2c   : > { %1838 = dma.hbm_to_vmem [thread:$0]  (!%p2298_p12), %s301_s10, 8192, %s303_s28, %s288_s0, %s2194_s25, %s2194_s25, %s2195_s18  }
  0x2d   : > { %s316_s2 = sand.u32 (!%p2284_p8), 1, %s2171_s19  }
  0x2e   : > { %s1414_s5 = sshll.u32 (!%p2284_p8), %s316_s2, 6  ;;  %s317_s15 = scalar_lea.sflag (!%p2284_p8), [#allocation4], %s316_s2 }
  0x2f   : > { %s2329_s16 = scalar_lea.vmem (!%p2284_p8), [#allocation3], %s1414_s5 }
  0x30   : > { %2142 = dma.done.wait (%p2276_p6), %s317_s15, 1024  }
  0x31   : > { %2144 = vsyncadd (%p2276_p6), %s317_s15, 4294966272  ;;  %s326_s3 = sand.u32 1, %s2261_s24   ;;  %s1415_s12 = sshll.u32 %s316_s2, 9 }
  0x32   : > { %s327_s0 = scalar_lea.sflag [#allocation7], %s326_s3  ;;  %s2336_s17 = scalar_lea.vmem [#allocation6], %s1415_s12 }
  0x33   : > { %2146 = dma.done.wait (%p2276_p6), %s327_s0, 8192  }
  0x34   : > { %2148 = vsyncadd (%p2276_p6), %s327_s0, 4294959104 }
  0x35   : > { %2150 = dma.done.wait (%p67_p3), [#allocation7], 32  }
  0x36   : > { %2152 = vsyncadd (%p67_p3), [#allocation7], 4294967264 }
  0x37   : > { %2154 = dma.done.wait (%p67_p3), [#allocation10], 1024  }
  0x38   : > { %2156 = vsyncadd (%p67_p3), [#allocation10], 4294966272  ;;  %p1418_p1 = scmp.ne.s32.totalorder %s2179_s21, 0 }
  0x3a   : > { %382 = sbr.rel (%p1418_p1) target bundleno = 72 (0x48), region = 56 }
  0x3f   : > { %v2196_v0 = vmov 0.0  }
  0x40   : > { %383 = vst [vmem:[#allocation2 + $0x30] sm:$0xff] %v2196_v0 }
  0x41   : > { %384 = vst [vmem:[#allocation2] sm:$0xff] %v2196_v0 }
  0x42   : > { %385 = vst [vmem:[#allocation2 + $0x18] sm:$0xff] %v2196_v0 }
  0x43   : > { %386 = vst [vmem:[#allocation2 + $0x10] sm:$0xff] %v2196_v0 }
  0x44   : > { %387 = vst [vmem:[#allocation2 + $0x8] sm:$0xff] %v2196_v0 }
  0x45   : > { %388 = vst [vmem:[#allocation2 + $0x20] sm:$0xff] %v2196_v0 }
  0x46   : > { %389 = vst [vmem:[#allocation2 + $0x28] sm:$0xff] %v2196_v0 }
  0x47   : > { %390 = vst [vmem:[#allocation2 + $0x38] sm:$0xff] %v2196_v0 }
  0x48 PF: > { %v1509_v1 = vld [vmem:[%s2336_s17 + $0x70] sm:$0xf]  ;;  %v1756_v2 = vld [vmem:[%s2336_s17 + $0x74] sm:$0xf0]  ;;  %v1501_v12 = vld [vmem:[%s2336_s17 + $0x60] sm:$0xf] }
  0x49   : > { %v1573_v3 = vld [vmem:[%s2336_s17 + $0xf0] sm:$0xf]  ;;  %v1510_v4 = vor.u32 %v1756_v2, %v1509_v1  ;;  %v1772_v5 = vld [vmem:[%s2336_s17 + $0xf4] sm:$0xf0]  ;;  %v1754_v14 = vld [vmem:[%s2336_s17 + $0x64] sm:$0xf0] }
  0x4a   : > { %v1637_v6 = vld [vmem:[%s2336_s17 + $0x170] sm:$0xf]  ;;  %v1788_v7 = vld [vmem:[%s2336_s17 + $0x174] sm:$0xf0]  ;;  %v1574_v8 = vor.u32 %v1772_v5, %v1573_v3  ;;  %v1565_v15 = vld [vmem:[%s2336_s17 + $0xe0] sm:$0xf]  ;;  %v1502_v17 = vor.u32 %v1754_v14, %v1501_v12 }
  0x4b   : > { %v1638_v9 = vor.u32 %v1788_v7, %v1637_v6  ;;  %v1701_v10 = vld [vmem:[%s2336_s17 + $0x1f0] sm:$0xf]  ;;  %v1804_v11 = vld [vmem:[%s2336_s17 + $0x1f4] sm:$0xf0]  ;;  %831 = vmatpush.bf16.msra.mxu0 %v1510_v4  ;;  %v1770_v16 = vld [vmem:[%s2336_s17 + $0xe4] sm:$0xf0] }
  0x4c   : > { %v1702_v13 = vor.u32 %v1804_v11, %v1701_v10  ;;  %850 = vmatpush.bf16.msra.mxu1 %v1574_v8  ;;  %v1566_v18 = vor.u32 %v1770_v16, %v1565_v15  ;;  %v1629_v19 = vld [vmem:[%s2336_s17 + $0x160] sm:$0xf]  ;;  %v1786_v20 = vld [vmem:[%s2336_s17 + $0x164] sm:$0xf0]  ;;  %v1493_v24 = vld [vmem:[%s2336_s17 + $0x50] sm:$0xf] }
  0x4d   : > { %869 = vmatpush.bf16.msra.mxu2 %v1638_v9  ;;  %v1693_v21 = vld [vmem:[%s2336_s17 + $0x1e0] sm:$0xf]  ;;  %v1630_v22 = vor.u32 %v1786_v20, %v1629_v19  ;;  %v1802_v23 = vld [vmem:[%s2336_s17 + $0x1e4] sm:$0xf0]  ;;  %v1752_v25 = vld [vmem:[%s2336_s17 + $0x54] sm:$0xf0] }
  0x4e   : > { %888 = vmatpush.bf16.msra.mxu3 %v1702_v13  ;;  %v1694_v26 = vor.u32 %v1802_v23, %v1693_v21  ;;  %v1557_v27 = vld [vmem:[%s2336_s17 + $0xd0] sm:$0xf]  ;;  %v1768_v28 = vld [vmem:[%s2336_s17 + $0xd4] sm:$0xf0]  ;;  %v1494_v30 = vor.u32 %v1752_v25, %v1493_v24  ;;  %v1485_v36 = vld [vmem:[%s2336_s17 + $0x40] sm:$0xf] }
  0x4f   : > { %v1621_v29 = vld [vmem:[%s2336_s17 + $0x150] sm:$0xf]  ;;  %832 = vmatpush.bf16.msra.mxu0 %v1502_v17  ;;  %v1784_v31 = vld [vmem:[%s2336_s17 + $0x154] sm:$0xf0]  ;;  %v1558_v34 = vor.u32 %v1768_v28, %v1557_v27  ;;  %v1750_v37 = vld [vmem:[%s2336_s17 + $0x44] sm:$0xf0] }
  0x50   : > { %v1685_v32 = vld [vmem:[%s2336_s17 + $0x1d0] sm:$0xf]  ;;  %v1800_v33 = vld [vmem:[%s2336_s17 + $0x1d4] sm:$0xf0]  ;;  %851 = vmatpush.bf16.msra.mxu1 %v1566_v18  ;;  %v1622_v35 = vor.u32 %v1784_v31, %v1621_v29  ;;  %v1549_v38 = vld [vmem:[%s2336_s17 + $0xc0] sm:$0xf]  ;;  %v1486_v45 = vor.u32 %v1750_v37, %v1485_v36 }
  0x51   : > { %870 = vmatpush.bf16.msra.mxu2 %v1630_v22  ;;  %v1686_v39 = vor.u32 %v1800_v33, %v1685_v32  ;;  %v1766_v40 = vld [vmem:[%s2336_s17 + $0xc4] sm:$0xf0]  ;;  %v1613_v41 = vld [vmem:[%s2336_s17 + $0x140] sm:$0xf]  ;;  %v1477_v48 = vld [vmem:[%s2336_s17 + $0x30] sm:$0xf] }
  0x52   : > { %889 = vmatpush.bf16.msra.mxu3 %v1694_v26  ;;  %v1782_v42 = vld [vmem:[%s2336_s17 + $0x144] sm:$0xf0]  ;;  %v1677_v43 = vld [vmem:[%s2336_s17 + $0x1c0] sm:$0xf]  ;;  %v1550_v46 = vor.u32 %v1766_v40, %v1549_v38  ;;  %v1748_v49 = vld [vmem:[%s2336_s17 + $0x34] sm:$0xf0] }
  0x53   : > { %v1798_v44 = vld [vmem:[%s2336_s17 + $0x1c4] sm:$0xf0]  ;;  %833 = vmatpush.bf16.msra.mxu0 %v1494_v30  ;;  %v1614_v47 = vor.u32 %v1782_v42, %v1613_v41  ;;  %v1541_v50 = vld [vmem:[%s2336_s17 + $0xb0] sm:$0xf]  ;;  %v1764_v52 = vld [vmem:[%s2336_s17 + $0xb4] sm:$0xf0]  ;;  %v1478_v57 = vor.u32 %v1748_v49, %v1477_v48 }
  0x54   : > { %852 = vmatpush.bf16.msra.mxu1 %v1558_v34  ;;  %v1678_v51 = vor.u32 %v1798_v44, %v1677_v43  ;;  %v1605_v53 = vld [vmem:[%s2336_s17 + $0x130] sm:$0xf]  ;;  %v1780_v54 = vld [vmem:[%s2336_s17 + $0x134] sm:$0xf0]  ;;  %v1542_v58 = vor.u32 %v1764_v52, %v1541_v50  ;;  %v1469_v60 = vld [vmem:[%s2336_s17 + $0x20] sm:$0xf] }
  0x55   : > { %871 = vmatpush.bf16.msra.mxu2 %v1622_v35  ;;  %v1669_v55 = vld [vmem:[%s2336_s17 + $0x1b0] sm:$0xf]  ;;  %v1796_v56 = vld [vmem:[%s2336_s17 + $0x1b4] sm:$0xf0]  ;;  %v1606_v59 = vor.u32 %v1780_v54, %v1605_v53  ;;  %v1746_v61 = vld [vmem:[%s2336_s17 + $0x24] sm:$0xf0] }
  0x56   : > { %890 = vmatpush.bf16.msra.mxu3 %v1686_v39  ;;  %v1533_v62 = vld [vmem:[%s2336_s17 + $0xa0] sm:$0xf]  ;;  %v1670_v63 = vor.u32 %v1796_v56, %v1669_v55  ;;  %v1762_v0 = vld [vmem:[%s2336_s17 + $0xa4] sm:$0xf0]  ;;  %v1470_v5 = vor.u32 %v1746_v61, %v1469_v60  ;;  %v1461_v8 = vld [vmem:[%s2336_s17 + $0x10] sm:$0xf] }
  0x57   : > { %834 = vmatpush.bf16.msra.mxu0 %v1486_v45  ;;  %v1597_v1 = vld [vmem:[%s2336_s17 + $0x120] sm:$0xf]  ;;  %v1778_v2 = vld [vmem:[%s2336_s17 + $0x124] sm:$0xf0]  ;;  %v1534_v6 = vor.u32 %v1762_v0, %v1533_v62  ;;  %v1744_v9 = vld [vmem:[%s2336_s17 + $0x14] sm:$0xf0] }
  0x58   : > { %853 = vmatpush.bf16.msra.mxu1 %v1550_v46  ;;  %v1661_v3 = vld [vmem:[%s2336_s17 + $0x1a0] sm:$0xf]  ;;  %v1794_v4 = vld [vmem:[%s2336_s17 + $0x1a4] sm:$0xf0]  ;;  %v1598_v7 = vor.u32 %v1778_v2, %v1597_v1  ;;  %v1525_v10 = vld [vmem:[%s2336_s17 + $0x90] sm:$0xf]  ;;  %v1462_v18 = vor.u32 %v1744_v9, %v1461_v8 }
  0x59   : > { %872 = vmatpush.bf16.msra.mxu2 %v1614_v47  ;;  %v1662_v11 = vor.u32 %v1794_v4, %v1661_v3  ;;  %v1760_v12 = vld [vmem:[%s2336_s17 + $0x94] sm:$0xf0]  ;;  %v1589_v13 = vld [vmem:[%s2336_s17 + $0x110] sm:$0xf]  ;;  %v1453_v17 = vld [vmem:[%s2336_s17] sm:$0xf] }
  0x5a   : > { %891 = vmatpush.bf16.msra.mxu3 %v1678_v51  ;;  %v1776_v14 = vld [vmem:[%s2336_s17 + $0x114] sm:$0xf0]  ;;  %v1653_v15 = vld [vmem:[%s2336_s17 + $0x190] sm:$0xf]  ;;  %v1742_v19 = vld [vmem:[%s2336_s17 + $0x4] sm:$0xf0]  ;;  %v1526_v22 = vor.u32 %v1760_v12, %v1525_v10 }
  0x5b   : > { %835 = vmatpush.bf16.msra.mxu0 %v1478_v57  ;;  %v1792_v16 = vld [vmem:[%s2336_s17 + $0x194] sm:$0xf0]  ;;  %v1517_v20 = vld [vmem:[%s2336_s17 + $0x80] sm:$0xf]  ;;  %v1758_v21 = vld [vmem:[%s2336_s17 + $0x84] sm:$0xf0]  ;;  %v1590_v23 = vor.u32 %v1776_v14, %v1589_v13  ;;  %v1454_v35 = vor.u32 %v1742_v19, %v1453_v17 }
  0x5c   : > { %854 = vmatpush.bf16.msra.mxu1 %v1542_v58  ;;  %v1581_v24 = vld [vmem:[%s2336_s17 + $0x100] sm:$0xf]  ;;  %v1774_v25 = vld [vmem:[%s2336_s17 + $0x104] sm:$0xf0]  ;;  %v1654_v27 = vor.u32 %v1792_v16, %v1653_v15  ;;  %v1735_v30 = vld [vmem:[%s2329_s16 + $0xc] sm:$0xf0]  ;;  %v1518_v39 = vor.u32 %v1758_v21, %v1517_v20 }
  0x5d   : > { %873 = vmatpush.bf16.msra.mxu2 %v1606_v59  ;;  %v1645_v26 = vld [vmem:[%s2336_s17 + $0x180] sm:$0xf]  ;;  %v1790_v28 = vld [vmem:[%s2336_s17 + $0x184] sm:$0xf0]  ;;  %v1733_v31 = vld [vmem:[%s2329_s16 + $0x4] sm:$0xf]  ;;  %v1582_v40 = vor.u32 %v1774_v25, %v1581_v24 }
  0x5e   : > { %892 = vmatpush.bf16.msra.mxu3 %v1670_v63  ;;  %v1421_v29 = vld [vmem:[%s2329_s16] sm:$0xf]  ;;  %v1423_v32 = vld [vmem:[%s2329_s16 + $0x10] sm:$0xf0]  ;;  %v1639_v34 = vld [vmem:[%s2336_s17 + $0x178] sm:$0xf0]  ;;  %v1646_v44 = vor.u32 %v1790_v28, %v1645_v26 }
  0x5f   : > { %836 = vmatpush.bf16.msra.mxu0 %v1470_v5  ;;  %v1787_v33 = vld [vmem:[%s2336_s17 + $0x174] sm:$0xf]  ;;  %v1429_v36 = vld [vmem:[%s2329_s16 + $0x8] sm:$0xf]  ;;  %v1575_v38 = vld [vmem:[%s2336_s17 + $0xf8] sm:$0xf0]  ;;  %v2430_v49 = vor.u32 %v1735_v30, %v1421_v29  ;;  %v2435_v54 = vor.u32 %v1733_v31, %v1423_v32 }
  0x60   : > { %855 = vmatpush.bf16.msra.mxu1 %v1534_v6  ;;  %v1771_v37 = vld [vmem:[%s2336_s17 + $0xf4] sm:$0xf]  ;;  %v1736_v41 = vld [vmem:[%s2329_s16 + $0x14] sm:$0xf0]  ;;  %v1734_v42 = vld [vmem:[%s2329_s16 + $0xc] sm:$0xf]  ;;  %v1642_v45 = vor.u32 %v1787_v33, %v1639_v34 }
  0x61   : > { %874 = vmatpush.bf16.msra.mxu2 %v1598_v7  ;;  %v1431_v43 = vld [vmem:[%s2329_s16 + $0x18] sm:$0xf0]  ;;  %v1755_v46 = vld [vmem:[%s2336_s17 + $0x74] sm:$0xf]  ;;  %v1578_v50 = vor.u32 %v1771_v37, %v1575_v38  ;;  %v1785_v52 = vld [vmem:[%s2336_s17 + $0x164] sm:$0xf]  ;;  %v2437_v55 = vor.u32 %v1736_v41, %v1429_v36 }
  0x62   : > { %893 = vmatpush.bf16.msra.mxu3 %v1662_v11  ;;  %v1511_v47 = vld [vmem:[%s2336_s17 + $0x78] sm:$0xf0]  ;;  %v1803_v48 = vld [vmem:[%s2336_s17 + $0x1f4] sm:$0xf]  ;;  %v1631_v53 = vld [vmem:[%s2336_s17 + $0x168] sm:$0xf0]  ;;  %v2441_v58 = vor.u32 %v1734_v42, %v1431_v43 }
  0x63   : > { %837 = vmatpush.bf16.msra.mxu0 %v1462_v18  ;;  %v1703_v51 = vld [vmem:[%s2336_s17 + $0x1f8] sm:$0xf0]  ;;  %v1769_v56 = vld [vmem:[%s2336_s17 + $0xe4] sm:$0xf]  ;;  %v1567_v57 = vld [vmem:[%s2336_s17 + $0xe8] sm:$0xf0]  ;;  %v1514_v59 = vor.u32 %v1755_v46, %v1511_v47  ;;  %v1634_v61 = vor.u32 %v1785_v52, %v1631_v53 }
  0x64   : > { %856 = vmatpush.bf16.msra.mxu1 %v1526_v22  ;;  %v1706_v60 = vor.u32 %v1803_v48, %v1703_v51  ;;  %v1753_v62 = vld [vmem:[%s2336_s17 + $0x64] sm:$0xf]  ;;  %v1503_v63 = vld [vmem:[%s2336_s17 + $0x68] sm:$0xf0]  ;;  %v1570_v1 = vor.u32 %v1769_v56, %v1567_v57  ;;  %v1783_v3 = vld [vmem:[%s2336_s17 + $0x154] sm:$0xf] }
  0x65   : > { %875 = vmatpush.bf16.msra.mxu2 %v1590_v23  ;;  %v1801_v0 = vld [vmem:[%s2336_s17 + $0x1e4] sm:$0xf]  ;;  %v1695_v2 = vld [vmem:[%s2336_s17 + $0x1e8] sm:$0xf0]  ;;  %v1623_v4 = vld [vmem:[%s2336_s17 + $0x158] sm:$0xf0]  ;;  %v1506_v7 = vor.u32 %v1753_v62, %v1503_v63 }
  0x66   : > { %894 = vmatpush.bf16.msra.mxu3 %v1654_v27  ;;  %v1767_v5 = vld [vmem:[%s2336_s17 + $0xd4] sm:$0xf]  ;;  %v1559_v6 = vld [vmem:[%s2336_s17 + $0xd8] sm:$0xf0]  ;;  %v1698_v8 = vor.u32 %v1801_v0, %v1695_v2  ;;  %v1626_v9 = vor.u32 %v1783_v3, %v1623_v4  ;;  %v1781_v15 = vld [vmem:[%s2336_s17 + $0x144] sm:$0xf] }
  0x67   : > { %838 = vmatpush.bf16.msra.mxu0 %v1454_v35  ;;  %v1751_v10 = vld [vmem:[%s2336_s17 + $0x54] sm:$0xf]  ;;  %v1495_v11 = vld [vmem:[%s2336_s17 + $0x58] sm:$0xf0]  ;;  %v1562_v13 = vor.u32 %v1767_v5, %v1559_v6  ;;  %v1615_v16 = vld [vmem:[%s2336_s17 + $0x148] sm:$0xf0] }
  0x68   : > { %857 = vmatpush.bf16.msra.mxu1 %v1518_v39  ;;  %v1799_v12 = vld [vmem:[%s2336_s17 + $0x1d4] sm:$0xf]  ;;  %v1687_v14 = vld [vmem:[%s2336_s17 + $0x1d8] sm:$0xf0]  ;;  %v1765_v17 = vld [vmem:[%s2336_s17 + $0xc4] sm:$0xf]  ;;  %v1498_v19 = vor.u32 %v1751_v10, %v1495_v11  ;;  %v1618_v24 = vor.u32 %v1781_v15, %v1615_v16 }
  0x69   : > { %876 = vmatpush.bf16.msra.mxu2 %v1582_v40  ;;  %v1551_v18 = vld [vmem:[%s2336_s17 + $0xc8] sm:$0xf0]  ;;  %v1749_v20 = vld [vmem:[%s2336_s17 + $0x44] sm:$0xf]  ;;  %v1690_v23 = vor.u32 %v1799_v12, %v1687_v14  ;;  %v1437_v26 = vld [vmem:[%s2329_s16 + $0x20] sm:$0xf] }
  0x6a   : > { %895 = vmatpush.bf16.msra.mxu3 %v1646_v44  ;;  %839 = vmatmul.bf16.vlgmr.msra.gmra.mxu0 %v2430_v49  ;;  %v1487_v21 = vld [vmem:[%s2336_s17 + $0x48] sm:$0xf0]  ;;  %v1797_v22 = vld [vmem:[%s2336_s17 + $0x1c4] sm:$0xf]  ;;  %v1739_v27 = vld [vmem:[%s2329_s16 + $0x2c] sm:$0xf0]  ;;  %v1554_v28 = vor.u32 %v1765_v17, %v1551_v18 }
  0x6b   : > { %858 = vmatmul.bf16.vlgmr.msra.gmra.mxu1 %v2435_v54  ;;  %907 = vmatpush.bf16.msrb.mxu0 %v1514_v59  ;;  %v1679_v25 = vld [vmem:[%s2336_s17 + $0x1c8] sm:$0xf0]  ;;  %v1737_v29 = vld [vmem:[%s2329_s16 + $0x24] sm:$0xf]  ;;  %v1439_v30 = vld [vmem:[%s2329_s16 + $0x30] sm:$0xf0]  ;;  %v1490_v36 = vor.u32 %v1749_v20, %v1487_v21 }
  0x6c   : > { %926 = vmatpush.bf16.msrb.mxu1 %v1578_v50  ;;  %877 = vmatmul.bf16.vlgmr.msra.gmra.mxu2 %v2437_v55  ;;  %v1779_v31 = vld [vmem:[%s2336_s17 + $0x134] sm:$0xf]  ;;  %v1607_v32 = vld [vmem:[%s2336_s17 + $0x138] sm:$0xf0]  ;;  %v1445_v33 = vld [vmem:[%s2329_s16 + $0x28] sm:$0xf]  ;;  %v1682_v40 = vor.u32 %v1797_v22, %v1679_v25  ;;  %v2487_v51 = vor.u32 %v1737_v29, %v1439_v30 }
  0x6d   : > { %945 = vmatpush.bf16.msrb.mxu2 %v1642_v45  ;;  %896 = vmatmul.bf16.vlgmr.msra.gmra.mxu3 %v2441_v58  ;;  %v1763_v34 = vld [vmem:[%s2336_s17 + $0xb4] sm:$0xf]  ;;  %v1543_v35 = vld [vmem:[%s2336_s17 + $0xb8] sm:$0xf0]  ;;  %v1740_v37 = vld [vmem:[%s2329_s16 + $0x34] sm:$0xf0]  ;;  %v1610_v41 = vor.u32 %v1779_v31, %v1607_v32  ;;  %v2482_v45 = vor.u32 %v1739_v27, %v1437_v26 }
  0x6e   : > { %964 = vmatpush.bf16.msrb.mxu3 %v1706_v60  ;;  %v1738_v38 = vld [vmem:[%s2329_s16 + $0x2c] sm:$0xf]  ;;  %v1447_v39 = vld [vmem:[%s2329_s16 + $0x38] sm:$0xf0]  ;;  %v1747_v42 = vld [vmem:[%s2336_s17 + $0x34] sm:$0xf]  ;;  %v1546_v46 = vor.u32 %v1763_v34, %v1543_v35  ;;  %v2489_v52 = vor.u32 %v1740_v37, %v1445_v33 }
  0x6f   : > { %908 = vmatpush.bf16.msrb.mxu0 %v1506_v7  ;;  %v1479_v43 = vld [vmem:[%s2336_s17 + $0x38] sm:$0xf0]  ;;  %v1795_v44 = vld [vmem:[%s2336_s17 + $0x1b4] sm:$0xf]  ;;  %v1777_v48 = vld [vmem:[%s2336_s17 + $0x124] sm:$0xf]  ;;  %v1450_v57 = vor.u32 %v1738_v38, %v1447_v39 }
  0x70   : > { %927 = vmatpush.bf16.msrb.mxu1 %v1570_v1  ;;  %v1671_v47 = vld [vmem:[%s2336_s17 + $0x1b8] sm:$0xf0]  ;;  %v1599_v50 = vld [vmem:[%s2336_s17 + $0x128] sm:$0xf0]  ;;  %v1761_v53 = vld [vmem:[%s2336_s17 + $0xa4] sm:$0xf]  ;;  %v1482_v59 = vor.u32 %v1747_v42, %v1479_v43 }
  0x71   : > { %946 = vmatpush.bf16.msrb.mxu2 %v1634_v61  ;;  %v1535_v56 = vld [vmem:[%s2336_s17 + $0xa8] sm:$0xf0]  ;;  %v1674_v60 = vor.u32 %v1795_v44, %v1671_v47  ;;  %v1602_v61 = vor.u32 %v1777_v48, %v1599_v50  ;;  %v1745_v62 = vld [vmem:[%s2336_s17 + $0x24] sm:$0xf]  ;;  %v1775_v3 = vld [vmem:[%s2336_s17 + $0x114] sm:$0xf] }
  0x72   : > { %965 = vmatpush.bf16.msrb.mxu3 %v1698_v8  ;;  %v1471_v63 = vld [vmem:[%s2336_s17 + $0x28] sm:$0xf0]  ;;  %v1793_v0 = vld [vmem:[%s2336_s17 + $0x1a4] sm:$0xf]  ;;  %v1538_v1 = vor.u32 %v1761_v53, %v1535_v56  ;;  %v1591_v4 = vld [vmem:[%s2336_s17 + $0x118] sm:$0xf0] }
  0x73   : > { %909 = vmatpush.bf16.msrb.mxu0 %v1498_v19  ;;  %v1663_v2 = vld [vmem:[%s2336_s17 + $0x1a8] sm:$0xf0]  ;;  %v1759_v5 = vld [vmem:[%s2336_s17 + $0x94] sm:$0xf]  ;;  %v1527_v6 = vld [vmem:[%s2336_s17 + $0x98] sm:$0xf0]  ;;  %v1474_v7 = vor.u32 %v1745_v62, %v1471_v63 }
  0x74   : > { %928 = vmatpush.bf16.msrb.mxu1 %v1562_v13  ;;  %v1666_v8 = vor.u32 %v1793_v0, %v1663_v2  ;;  %v1743_v10 = vld [vmem:[%s2336_s17 + $0x14] sm:$0xf]  ;;  %v1463_v11 = vld [vmem:[%s2336_s17 + $0x18] sm:$0xf0]  ;;  %v1530_v13 = vor.u32 %v1759_v5, %v1527_v6  ;;  %v1773_v15 = vld [vmem:[%s2336_s17 + $0x104] sm:$0xf] }
  0x75   : > { %947 = vmatpush.bf16.msrb.mxu2 %v1626_v9  ;;  %v1594_v9 = vor.u32 %v1775_v3, %v1591_v4  ;;  %v1791_v12 = vld [vmem:[%s2336_s17 + $0x194] sm:$0xf]  ;;  %v1655_v14 = vld [vmem:[%s2336_s17 + $0x198] sm:$0xf0]  ;;  %v1583_v16 = vld [vmem:[%s2336_s17 + $0x108] sm:$0xf0]  ;;  %v1466_v19 = vor.u32 %v1743_v10, %v1463_v11 }
  0x76   : > { %966 = vmatpush.bf16.msrb.mxu3 %v1690_v23  ;;  %v1757_v17 = vld [vmem:[%s2336_s17 + $0x84] sm:$0xf]  ;;  %v1519_v18 = vld [vmem:[%s2336_s17 + $0x88] sm:$0xf0]  ;;  %v1658_v20 = vor.u32 %v1791_v12, %v1655_v14  ;;  %v1586_v21 = vor.u32 %v1773_v15, %v1583_v16  ;;  %v391_v35 = vld [vmem:[#allocation2 + $0x30] sm:$0xff]  ;;  %p1707_p2 = scmp.ne.s32.totalorder %s2179_s21, 1 }
  0x77   : > { %910 = vmatpush.bf16.msrb.mxu0 %v1490_v36  ;;  %v1741_v22 = vld [vmem:[%s2336_s17 + $0x4] sm:$0xf]  ;;  %v1455_v23 = vld [vmem:[%s2336_s17 + $0x8] sm:$0xf0]  ;;  %v394_v16 = vld [vmem:[#allocation2 + $0x10] sm:$0xff] }
  0x78   : > { %929 = vmatpush.bf16.msrb.mxu1 %v1554_v28  ;;  %v1789_v25 = vld [vmem:[%s2336_s17 + $0x184] sm:$0xf]  ;;  %v1647_v26 = vld [vmem:[%s2336_s17 + $0x188] sm:$0xf0]  ;;  %v1458_v27 = vor.u32 %v1741_v22, %v1455_v23 }
  0x79   : > { %948 = vmatpush.bf16.msrb.mxu2 %v1618_v24  ;;  %v1522_v24 = vor.u32 %v1757_v17, %v1519_v18  ;;  %v1650_v28 = vor.u32 %v1789_v25, %v1647_v26  ;;  %v397_v62 = vld [vmem:[#allocation2 + $0x28] sm:$0xff]  ;;  %v396_v25 = vld [vmem:[#allocation2 + $0x20] sm:$0xff] }
  0x7a   : > { %967 = vmatpush.bf16.msrb.mxu3 %v1682_v40  ;;  %844 = vmatmul.bf16.gmra.mxu0 %v2482_v45 }
  0x7b   : > { %863 = vmatmul.bf16.gmra.mxu1 %v2487_v51  ;;  %911 = vmatpush.bf16.msrb.mxu0 %v1482_v59 }
  0x7c   : > { %930 = vmatpush.bf16.msrb.mxu1 %v1546_v46  ;;  %882 = vmatmul.bf16.gmra.mxu2 %v2489_v52 }
  0x7d   : > { %949 = vmatpush.bf16.msrb.mxu2 %v1610_v41  ;;  %901 = vmatmul.bf16.gmra.mxu3 %v1450_v57  ;;  %v393_v41 = vld [vmem:[#allocation2 + $0x18] sm:$0xff] }
  0x7e   : > { %968 = vmatpush.bf16.msrb.mxu3 %v1674_v60 }
  0x7f   : > { %912 = vmatpush.bf16.msrb.mxu0 %v1474_v7 }
  0x80   : > { %931 = vmatpush.bf16.msrb.mxu1 %v1538_v1 }
  0x81   : > { %950 = vmatpush.bf16.msrb.mxu2 %v1602_v61 }
  0x82   : > { %969 = vmatpush.bf16.msrb.mxu3 %v1666_v8 }
  0x83   : > { %913 = vmatpush.bf16.msrb.mxu0 %v1466_v19 }
  0x84   : > { %932 = vmatpush.bf16.msrb.mxu1 %v1530_v13 }
  0x85   : > { %951 = vmatpush.bf16.msrb.mxu2 %v1594_v9  ;;  %v392_v9 = vld [vmem:[#allocation2] sm:$0xff] }
  0x86   : > { %970 = vmatpush.bf16.msrb.mxu3 %v1658_v20 }
  0x87   : > { %914 = vmatpush.bf16.msrb.mxu0 %v1458_v27 }
  0x88   : > { %933 = vmatpush.bf16.msrb.mxu1 %v1522_v24 }
  0x89   : > { %952 = vmatpush.bf16.msrb.mxu2 %v1586_v21 }
  0x8a   : > { %971 = vmatpush.bf16.msrb.mxu3 %v1650_v28  ;;  %915 = vmatmul.bf16.vlgmr.msrb.gmra.mxu0 %v2430_v49 }
  0x8b   : > { %934 = vmatmul.bf16.vlgmr.msrb.gmra.mxu1 %v2435_v54 }
  0x8c   : > { %953 = vmatmul.bf16.vlgmr.msrb.gmra.mxu2 %v2437_v55 }
  0x8d   : > { %972 = vmatmul.bf16.vlgmr.msrb.gmra.mxu3 %v2441_v58 }
  0x9a   : > { %920 = vmatmul.bf16.gmra.mxu0 %v2482_v45 }
  0x9b   : > { %939 = vmatmul.bf16.gmra.mxu1 %v2487_v51  ;;  %v395_v51 = vld [vmem:[#allocation2 + $0x8] sm:$0xff] }
  0x9c   : > { %958 = vmatmul.bf16.gmra.mxu2 %v2489_v52 }
  0x9d   : > { %977 = vmatmul.bf16.gmra.mxu3 %v1450_v57 }
  0xe7   : > { %v840_v29 = vpop.f32.mrf.mxu0 }
  0xe8   : > { %v859_v30 = vpop.f32.mrf.mxu1 }
  0xe9   : > { %v860_v31 = vadd.f32 %v859_v30, %v840_v29 }
  0xef   : > { %v878_v32 = vpop.f32.mrf.mxu2  ;;  %v842_v49 = vpop.f32.mrf.mxu0 }
  0xf0   : > { %v879_v33 = vadd.f32 %v878_v32, %v860_v31  ;;  %v897_v34 = vpop.f32.mrf.mxu3  ;;  %v861_v54 = vpop.f32.mrf.mxu1 }
  0xf1   : > { %v862_v58 = vadd.f32 %v861_v54, %v842_v49 }
  0xf2   : > { %v898_v36 = vadd.f32 %v897_v34, %v879_v33  ;;  %v398_v33 = vld [vmem:[#allocation2 + $0x38] sm:$0xff] }
  0xf4   : > { %v983_v55 = vadd.f32 %v898_v36, %v391_v35 }
  0xf6   : > { %991 = vst [vmem:[#allocation2 + $0x30] sm:$0xff] %v983_v55 }
  0xf7   : > { %v880_v37 = vpop.f32.mrf.mxu2  ;;  %v845_v40 = vpop.f32.mrf.mxu0 }
  0xf8   : > { %v881_v38 = vadd.f32 %v880_v37, %v862_v58  ;;  %v899_v39 = vpop.f32.mrf.mxu3  ;;  %v864_v42 = vpop.f32.mrf.mxu1 }
  0xf9   : > { %v865_v45 = vadd.f32 %v864_v42, %v845_v40 }
  0xfa   : > { %v900_v43 = vadd.f32 %v899_v39, %v881_v38 }
  0xfc   : > { %v985_v44 = vadd.f32 %v900_v43, %v393_v41 }
  0xfe   : > { %993 = vst [vmem:[#allocation2 + $0x18] sm:$0xff] %v985_v44 }
  0xff   : > { %v883_v46 = vpop.f32.mrf.mxu2  ;;  %v847_v50 = vpop.f32.mrf.mxu0 }
 0x100   : > { %v884_v47 = vadd.f32 %v883_v46, %v865_v45  ;;  %v902_v48 = vpop.f32.mrf.mxu3  ;;  %v866_v52 = vpop.f32.mrf.mxu1 }
 0x101   : > { %v867_v57 = vadd.f32 %v866_v52, %v847_v50 }
 0x102   : > { %v903_v53 = vadd.f32 %v902_v48, %v884_v47 }
 0x104   : > { %v987_v56 = vadd.f32 %v903_v53, %v395_v51 }
 0x106   : > { %995 = vst [vmem:[#allocation2 + $0x8] sm:$0xff] %v987_v56 }
 0x107   : > { %v885_v59 = vpop.f32.mrf.mxu2  ;;  %v916_v63 = vpop.f32.mrf.mxu0 }
 0x108   : > { %v886_v60 = vadd.f32 %v885_v59, %v867_v57  ;;  %v904_v61 = vpop.f32.mrf.mxu3  ;;  %v935_v0 = vpop.f32.mrf.mxu1 }
 0x109   : > { %v936_v3 = vadd.f32 %v935_v0, %v916_v63 }
 0x10a   : > { %v905_v1 = vadd.f32 %v904_v61, %v886_v60 }
 0x10c   : > { %v989_v2 = vadd.f32 %v905_v1, %v397_v62 }
 0x10e   : > { %997 = vst [vmem:[#allocation2 + $0x28] sm:$0xff] %v989_v2 }
 0x10f   : > { %v954_v4 = vpop.f32.mrf.mxu2  ;;  %v918_v7 = vpop.f32.mrf.mxu0 }
 0x110   : > { %v973_v5 = vpop.f32.mrf.mxu3  ;;  %v955_v6 = vadd.f32 %v954_v4, %v936_v3  ;;  %v937_v8 = vpop.f32.mrf.mxu1 }
 0x111   : > { %v938_v12 = vadd.f32 %v937_v8, %v918_v7 }
 0x112   : > { %v974_v10 = vadd.f32 %v973_v5, %v955_v6 }
 0x114   : > { %v984_v11 = vadd.f32 %v974_v10, %v392_v9 }
 0x116   : > { %992 = vst [vmem:[#allocation2] sm:$0xff] %v984_v11 }
 0x117   : > { %v956_v13 = vpop.f32.mrf.mxu2  ;;  %v921_v17 = vpop.f32.mrf.mxu0 }
 0x118   : > { %v975_v14 = vpop.f32.mrf.mxu3  ;;  %v957_v15 = vadd.f32 %v956_v13, %v938_v12  ;;  %v940_v18 = vpop.f32.mrf.mxu1 }
 0x119   : > { %v941_v21 = vadd.f32 %v940_v18, %v921_v17 }
 0x11a   : > { %v976_v19 = vadd.f32 %v975_v14, %v957_v15 }
 0x11c   : > { %v986_v20 = vadd.f32 %v976_v19, %v394_v16 }
 0x11e   : > { %994 = vst [vmem:[#allocation2 + $0x10] sm:$0xff] %v986_v20 }
 0x11f   : > { %v959_v22 = vpop.f32.mrf.mxu2  ;;  %v923_v27 = vpop.f32.mrf.mxu0 }
 0x120   : > { %v978_v23 = vpop.f32.mrf.mxu3  ;;  %v960_v24 = vadd.f32 %v959_v22, %v941_v21  ;;  %v942_v28 = vpop.f32.mrf.mxu1 }
 0x121   : > { %v943_v30 = vadd.f32 %v942_v28, %v923_v27 }
 0x122   : > { %v979_v26 = vadd.f32 %v978_v23, %v960_v24 }
 0x124   : > { %v988_v29 = vadd.f32 %v979_v26, %v396_v25 }
 0x126   : > { %996 = vst [vmem:[#allocation2 + $0x20] sm:$0xff] %v988_v29 }
 0x127   : > { %v961_v31 = vpop.f32.mrf.mxu2 }
 0x128   : > { %v962_v32 = vadd.f32 %v961_v31, %v943_v30  ;;  %v980_v34 = vpop.f32.mrf.mxu3 }
 0x12a   : > { %v981_v49 = vadd.f32 %v980_v34, %v962_v32  ;;  %1002 = sbr.rel (%p1707_p2) target bundleno = 358 (0x166), region = 60 }
 0x12c   : > { %v990_v35 = vadd.f32 %v981_v49, %v398_v33 }
 0x12e   : > { %998 = vst [vmem:[#allocation2 + $0x38] sm:$0xff] %v990_v35 }
 0x12f   : > { %v1003_v54 = vld [vmem:[#allocation2 + $0x30] sm:$0xff]  ;;  %v1011_v36 = vld [vmem:[#allocation8] sm:$0x3]  ;;  %v1005_v38 = vld [vmem:[#allocation2 + $0x18] sm:$0xff] }
 0x130   : > { %v1004_v55 = vld [vmem:[#allocation2] sm:$0xff]  ;;  %v1013_v58 = vperm.slane %v1011_v36, 0  ;;  %v1014_v37 = vperm.slane %v1011_v36, 1  ;;  %v1006_v39 = vld [vmem:[#allocation2 + $0x10] sm:$0xff]  ;;  %v1007_v40 = vld [vmem:[#allocation2 + $0x8] sm:$0xff] }
 0x131   : > { %v1008_v41 = vld [vmem:[#allocation2 + $0x20] sm:$0xff]  ;;  %v1009_v56 = vld [vmem:[#allocation2 + $0x28] sm:$0xff]  ;;  %v1187_v16 = vld [vmem:[#allocation9 + $0x10] sm:$0xff] }
 0x132   : > { %v1017_v42 = vadd.f32 %v1013_v58, %v1003_v54  ;;  %v1018_v43 = vadd.f32 %v1014_v37, %v1004_v55  ;;  %v1019_v44 = vadd.f32 %v1013_v58, %v1005_v38  ;;  %v1020_v45 = vadd.f32 %v1014_v37, %v1006_v39  ;;  %v1189_v25 = vld [vmem:[#allocation9 + $0x20] sm:$0xff] }
 0x133   : > { %v1021_v46 = vadd.f32 %v1013_v58, %v1007_v40  ;;  %v1022_v47 = vadd.f32 %v1014_v37, %v1008_v41  ;;  %v1023_v60 = vadd.f32 %v1013_v58, %v1009_v56 }
 0x134   : > { %v1708_v48 = vmul.f32 -1.442695, %v1017_v42  ;;  %v1709_v50 = vmul.f32 -1.442695, %v1018_v43  ;;  %v1710_v51 = vmul.f32 -1.442695, %v1019_v44 }
 0x135   : > { %v1711_v52 = vmul.f32 -1.442695, %v1020_v45  ;;  %v1712_v53 = vmul.f32 -1.442695, %v1021_v46  ;;  %v1713_v57 = vmul.f32 -1.442695, %v1022_v47 }
 0x136   : > { %1909 = vpow2.f32 %v1708_v48  ;;  %v1010_v59 = vld [vmem:[#allocation2 + $0x38] sm:$0xff]  ;;  %v1714_v1 = vmul.f32 -1.442695, %v1023_v60 }
 0x137   : > { %1911 = vpow2.f32 %v1709_v50  ;;  %v1024_v61 = vadd.f32 %v1014_v37, %v1010_v59 }
 0x138   : > { %1913 = vpow2.f32 %v1710_v51 }
 0x139   : > { %1915 = vpow2.f32 %v1711_v52  ;;  %v1715_v4 = vmul.f32 -1.442695, %v1024_v61 }
 0x13a   : > { %1917 = vpow2.f32 %v1712_v53 }
 0x13b   : > { %1919 = vpow2.f32 %v1713_v57 }
 0x13c   : > { %v1910_v62 = vpop.eup %1909 }
 0x13d   : > { %v1912_v63 = vpop.eup %1911  ;;  %v1049_v0 = vadd.f32 1.0, %v1910_v62 }
 0x13e   : > { %v1914_v2 = vpop.eup %1913  ;;  %v2524_v3 = vadd.f32 1.0, %v1912_v63 }
 0x13f   : > { %v1916_v5 = vpop.eup %1915  ;;  %1921 = vrcp.f32 %v1049_v0  ;;  %v1066_v7 = vand.u32 2147483647, %v1049_v0  ;;  %v1068_v9 = vand.u32 2147483648, %v1049_v0  ;;  %v2527_v10 = vadd.f32 1.0, %v1914_v2 }
 0x140   : > { %v1918_v6 = vpop.eup %1917  ;;  %1923 = vrcp.f32 %v2524_v3  ;;  %v2529_v11 = vadd.f32 1.0, %v1916_v5  ;;  %v1081_v12 = vand.u32 2147483647, %v2524_v3  ;;  %v1083_v13 = vand.u32 2147483648, %v2524_v3 }
 0x141   : > { %v1920_v8 = vpop.eup %1919  ;;  %1925 = vpow2.f32 %v1714_v1  ;;  %v2533_v14 = vadd.f32 1.0, %v1918_v6  ;;  %vm1062_vm0 = vweird.f32 %v1049_v0  ;;  %vm1077_vm1 = vweird.f32 %v2524_v3 }
 0x142   : > { %1927 = vpow2.f32 %v1715_v4  ;;  %v1098_v15 = vand.u32 2147483648, %v2527_v10  ;;  %vm2538_vm2 = vcmp.eq.f32.partialorder %v1066_v7, 8.507059e+37  ;;  %v1096_v17 = vand.u32 2147483647, %v2527_v10 }
 0x143   : > { %1929 = vrcp.f32 %v2527_v10  ;;  %v2544_v18 = vadd.f32 1.0, %v1920_v8  ;;  %v1069_v20 = vor.u32 1.1754944e-38, %v1068_v9  ;;  %v1111_v21 = vand.u32 2147483647, %v2529_v11 }
 0x144   : > { %1931 = vrcp.f32 %v2529_v11  ;;  %v1113_v22 = vand.u32 2147483648, %v2529_v11  ;;  %vm2549_vm3 = vcmp.eq.f32.partialorder %v1081_v12, 8.507059e+37  ;;  %v1084_v26 = vor.u32 1.1754944e-38, %v1083_v13 }
 0x145   : > { %v1922_v19 = vpop.eup %1921  ;;  %1933 = vrcp.f32 %v2533_v14  ;;  %vm1092_vm4 = vweird.f32 %v2527_v10  ;;  %v1099_v29 = vor.u32 1.1754944e-38, %v1098_v15  ;;  %vm1107_vm5 = vweird.f32 %v2529_v11  ;;  %v1186_v15 = vld [vmem:[#allocation9 + $0x8] sm:$0xff] }
 0x146   : > { %v1924_v23 = vpop.eup %1923  ;;  %v1058_v24 = vmul.f32 %v1922_v19, %v1049_v0  ;;  %v1128_v30 = vand.u32 2147483648, %v2533_v14  ;;  %vm1063_vm6 = vweird.f32 %v1922_v19  ;;  %vm2557_vm7 = vcmp.eq.f32.partialorder %v1096_v17, 8.507059e+37 }
 0x147   : > { %v1926_v27 = vpop.eup %1925  ;;  %v1073_v28 = vmul.f32 %v1924_v23, %v2524_v3  ;;  %vm1122_vm8 = vweird.f32 %v2533_v14  ;;  %1935 = vrcp.f32 %v2544_v18  ;;  %vm1078_vm9 = vweird.f32 %v1924_v23  ;;  %vm2573_vm12 = vmor %vm1062_vm0, %vm1063_vm6 }
 0x148   : > { %v1928_v31 = vpop.eup %1927  ;;  %v1059_v32 = vsub.f32 1.0, %v1058_v24  ;;  %vm2563_vm10 = vcmp.eq.f32.partialorder %v1111_v21, 8.507059e+37  ;;  %v1114_v54 = vor.u32 1.1754944e-38, %v1113_v22  ;;  %v1126_v36 = vand.u32 2147483647, %v2533_v14  ;;  %vm2581_vm14 = vmor %vm1077_vm1, %vm1078_vm9  ;;  %v1188_v24 = vld [vmem:[#allocation9 + $0x18] sm:$0xff] }
 0x149   : > { %v1930_v34 = vpop.eup %1929  ;;  %v1074_v49 = vsub.f32 1.0, %v1073_v28  ;;  %vm1137_vm11 = vweird.f32 %v2544_v18  ;;  %v1141_v38 = vand.u32 2147483647, %v2544_v18  ;;  %v1129_v43 = vor.u32 1.1754944e-38, %v1128_v30 }
 0x14a   : > { %v1932_v55 = vpop.eup %1931  ;;  %v1060_v58 = vmul.f32 %v1922_v19, %v1059_v32  ;;  %v1088_v37 = vmul.f32 %v1930_v34, %v2527_v10  ;;  %vm1093_vm13 = vweird.f32 %v1930_v34  ;;  %v2586_v51 = vadd.f32 1.0, %v1926_v27 }
 0x14b   : > { %v1934_v39 = vpop.eup %1933  ;;  %v1075_v41 = vmul.f32 %v1924_v23, %v1074_v49  ;;  %v1103_v42 = vmul.f32 %v1932_v55, %v2529_v11  ;;  %vm1108_vm15 = vweird.f32 %v1932_v55  ;;  %v2590_v59 = vadd.f32 1.0, %v1928_v31  ;;  %vm2599_vm1 = vmor %vm1092_vm4, %vm1093_vm13 }
 0x14c   : > { %v1061_v44 = vadd.f32 %v1922_v19, %v1060_v58  ;;  %v1089_v46 = vsub.f32 1.0, %v1088_v37  ;;  %v1118_v47 = vmul.f32 %v1934_v39, %v2533_v14  ;;  %vm1123_vm0 = vweird.f32 %v1934_v39  ;;  %v1185_v14 = vld [vmem:[#allocation9] sm:$0xff] }
 0x14d   : > { %v1076_v48 = vadd.f32 %v1924_v23, %v1075_v41  ;;  %v1104_v50 = vsub.f32 1.0, %v1103_v42  ;;  %v1936_v52 = vpop.eup %1935  ;;  %v1143_v5 = vand.u32 2147483648, %v2544_v18  ;;  %vm2617_vm4 = vmor %vm1122_vm8, %vm1123_vm0  ;;  %1937 = vrcp.f32 %v2586_v51 }
 0x14e   : > { %v1065_v53 = vsel %vm2573_vm12, %v1922_v19, %v1061_v44  ;;  %v1090_v56 = vmul.f32 %v1930_v34, %v1089_v46  ;;  %v1119_v57 = vsub.f32 1.0, %v1118_v47  ;;  %v1133_v0 = vmul.f32 %v1936_v52, %v2544_v18  ;;  %v1191_v46 = vld [vmem:[#allocation9 + $0x30] sm:$0xff] }
 0x14f   : > { %v1070_v60 = vsel %vm2538_vm2, %v1069_v20, %v1065_v53  ;;  %v1080_v61 = vsel %vm2581_vm14, %v1924_v23, %v1076_v48  ;;  %v1105_v63 = vmul.f32 %v1932_v55, %v1104_v50  ;;  %vm2609_vm2 = vmor %vm1107_vm5, %vm1108_vm15  ;;  %vm1127_vm5 = vcmp.eq.f32.partialorder %v1126_v36, 8.507059e+37 }
 0x150   : > { %1177 = vst [vmem:[#allocation11] sm:$0xff] %v1070_v60  ;;  %v1085_v1 = vsel %vm2549_vm3, %v1084_v26, %v1080_v61  ;;  %v1091_v2 = vadd.f32 %v1930_v34, %v1090_v56  ;;  %v1120_v4 = vmul.f32 %v1934_v39, %v1119_v57  ;;  %v1134_v8 = vsub.f32 1.0, %v1133_v0  ;;  %v1190_v26 = vld [vmem:[#allocation9 + $0x28] sm:$0xff] }
 0x151   : > { %1178 = vst [vmem:[#allocation11 + $0x8] sm:$0xff] %v1085_v1  ;;  %v1106_v6 = vadd.f32 %v1932_v55, %v1105_v63  ;;  %vm1138_vm3 = vweird.f32 %v1936_v52  ;;  %1939 = vrcp.f32 %v2590_v59  ;;  %v1144_v21 = vor.u32 1.1754944e-38, %v1143_v5 }
 0x152   : > { %v1095_v9 = vsel %vm2599_vm1, %v1930_v34, %v1091_v2  ;;  %v1121_v10 = vadd.f32 %v1934_v39, %v1120_v4  ;;  %v1135_v13 = vmul.f32 %v1936_v52, %v1134_v8  ;;  %vm2636_vm6 = vmor %vm1137_vm11, %vm1138_vm3  ;;  %vm1193_vm8 = vcmp.lt.f32.partialorder %v1185_v14, %v1070_v60 }
 0x153   : > { %v1100_v11 = vsel %vm2557_vm7, %v1099_v29, %v1095_v9  ;;  %v1110_v12 = vsel %vm2609_vm2, %v1932_v55, %v1106_v6  ;;  %vm1142_vm7 = vcmp.eq.f32.partialorder %v1141_v38, 8.507059e+37  ;;  %vm1194_vm9 = vcmp.lt.f32.partialorder %v1186_v15, %v1085_v1  ;;  %v1938_v27 = vpop.eup %1937 }
 0x154   : > { %1179 = vst [vmem:[#allocation11 + $0x10] sm:$0xff] %v1100_v11  ;;  %v1115_v17 = vsel %vm2563_vm10, %v1114_v54, %v1110_v12  ;;  %v1125_v19 = vsel %vm2617_vm4, %v1934_v39, %v1121_v10  ;;  %v1136_v23 = vadd.f32 %v1936_v52, %v1135_v13  ;;  %vm1195_vm12 = vcmp.lt.f32.partialorder %v1187_v16, %v1100_v11 }
 0x155   : > { %1180 = vst [vmem:[#allocation11 + $0x18] sm:$0xff] %v1115_v17  ;;  %v1130_v22 = vsel %vm1127_vm5, %v1129_v43, %v1125_v19  ;;  %vm1152_vm10 = vweird.f32 %v2586_v51  ;;  %v2197_v28 = vmov 0.0   ;;  %v1148_v32 = vmul.f32 %v1938_v27, %v2586_v51 }
 0x156   : > { %1181 = vst [vmem:[#allocation11 + $0x20] sm:$0xff] %v1130_v22  ;;  %v1140_v18 = vsel %vm2636_vm6, %v1936_v52, %v1136_v23  ;;  %v1716_v29 = vsel %vm1193_vm8, 1.0, %v2197_v28  ;;  %v1717_v30 = vsel %vm1194_vm9, 1.0, %v2197_v28  ;;  %v1156_v33 = vand.u32 2147483647, %v2586_v51  ;;  %v1192_v52 = vld [vmem:[#allocation9 + $0x38] sm:$0xff] }
 0x157   : > { %v1145_v31 = vsel %vm1142_vm7, %v1144_v21, %v1140_v18  ;;  %v1158_v34 = vand.u32 2147483648, %v2586_v51  ;;  %1217 = vst [vmem:[#allocation12] sm:$0xff] %v1716_v29  ;;  %v1940_v49 = vpop.eup %1939  ;;  %v1718_v35 = vsel %vm1195_vm12, 1.0, %v2197_v28  ;;  %vm1196_vm11 = vcmp.lt.f32.partialorder %v1188_v24, %v1115_v17 }
 0x158   : > { %1182 = vst [vmem:[#allocation11 + $0x28] sm:$0xff] %v1145_v31  ;;  %vm1197_vm13 = vcmp.lt.f32.partialorder %v1189_v25, %v1130_v22  ;;  %vm1198_vm14 = vcmp.lt.f32.partialorder %v1190_v26, %v1145_v31  ;;  %v1149_v54 = vsub.f32 1.0, %v1148_v32  ;;  %vm1153_vm15 = vweird.f32 %v1938_v27 }
 0x159   : > { %v1163_v36 = vmul.f32 %v1940_v49, %v2590_v59  ;;  %1218 = vst [vmem:[#allocation12 + $0x8] sm:$0xff] %v1717_v30  ;;  %v1719_v55 = vsel %vm1196_vm11, 1.0, %v2197_v28  ;;  %vm1167_vm0 = vweird.f32 %v2590_v59  ;;  %v1173_v58 = vand.u32 2147483648, %v2590_v59  ;;  %vm1154_vm2 = vmor %vm1152_vm10, %vm1153_vm15 }
 0x15a   : > { %1219 = vst [vmem:[#allocation12 + $0x10] sm:$0xff] %v1718_v35  ;;  %v1720_v37 = vsel %vm1197_vm13, 1.0, %v2197_v28  ;;  %v1721_v38 = vsel %vm1198_vm14, 1.0, %v2197_v28  ;;  %v1150_v39 = vmul.f32 %v1938_v27, %v1149_v54  ;;  %vm1168_vm1 = vweird.f32 %v1940_v49 }
 0x15b   : > { %v1164_v40 = vsub.f32 1.0, %v1163_v36  ;;  %v1171_v41 = vand.u32 2147483647, %v2590_v59  ;;  %1220 = vst [vmem:[#allocation12 + $0x18] sm:$0xff] %v1719_v55  ;;  %v1159_v42 = vor.u32 1.1754944e-38, %v1158_v34  ;;  %vm1157_vm4 = vcmp.eq.f32.partialorder %v1156_v33, 8.507059e+37  ;;  %vm1169_vm3 = vmor %vm1167_vm0, %vm1168_vm1 }
 0x15c   : > { %1221 = vst [vmem:[#allocation12 + $0x20] sm:$0xff] %v1720_v37  ;;  %v1151_v43 = vadd.f32 %v1938_v27, %v1150_v39  ;;  %v1174_v45 = vor.u32 1.1754944e-38, %v1173_v58 }
 0x15d   : > { %v1165_v44 = vmul.f32 %v1940_v49, %v1164_v40  ;;  %1222 = vst [vmem:[#allocation12 + $0x28] sm:$0xff] %v1721_v38  ;;  %vm1172_vm5 = vcmp.eq.f32.partialorder %v1171_v41, 8.507059e+37 }
 0x15e   : > { %v1155_v47 = vsel %vm1154_vm2, %v1938_v27, %v1151_v43 }
 0x15f   : > { %v1166_v48 = vadd.f32 %v1940_v49, %v1165_v44  ;;  %v1160_v50 = vsel %vm1157_vm4, %v1159_v42, %v1155_v47 }
 0x160   : > { %1183 = vst [vmem:[#allocation11 + $0x30] sm:$0xff] %v1160_v50  ;;  %vm1199_vm6 = vcmp.lt.f32.partialorder %v1191_v46, %v1160_v50 }
 0x161   : > { %v1170_v53 = vsel %vm1169_vm3, %v1940_v49, %v1166_v48  ;;  %v1722_v56 = vsel %vm1199_vm6, 1.0, %v2197_v28 }
 0x162   : > { %v1175_v51 = vsel %vm1172_vm5, %v1174_v45, %v1170_v53  ;;  %1223 = vst [vmem:[#allocation12 + $0x30] sm:$0xff] %v1722_v56 }
 0x163   : > { %1184 = vst [vmem:[#allocation11 + $0x38] sm:$0xff] %v1175_v51  ;;  %vm1200_vm7 = vcmp.lt.f32.partialorder %v1192_v52, %v1175_v51 }
 0x164   : > { %v1723_v57 = vsel %vm1200_vm7, 1.0, %v2197_v28 }
 0x165   : > { %1224 = vst [vmem:[#allocation12 + $0x38] sm:$0xff] %v1723_v57 }
 0x166 PF: > { %p1844_p3 = scmp.eq.s32.totalorder %s2261_s24, 1  ;;  %s1238_s6 = sshll.u32 %s2696_s4, 4  ;;  %s1239_s6 = int_to_ptr.hbm [resolvable:$true] %s1238_s6 }
 0x167   : > { %s2198_s18 = smov [#allocation11]   ;;  %s2199_s13 = smov 256  }
 0x168   : > { %s1236_s9 = sshll.u32 %s2198_s18, 4  ;;  %s2200_s14 = smov 16   ;;  %s1237_s9 = int_to_ptr.vmem [resolvable:$true] %s1236_s9 }
 0x169   : > { %1818 = dma.vmem_to_hbm [thread:$0]  (%p1844_p3), %s1237_s9, 1024, %s1239_s6, [#allocation5], %s2199_s13, %s2199_s13, %s2200_s14  }
 0x16a   : > { %s2201_s29 = smov [#allocation12]   ;;  %s2731_s8 = sld [smem:[#allocation24_spill]] }
 0x16b   : > { %s1256_s30 = sshll.u32 %s2201_s29, 4  ;;  %s1257_s30 = int_to_ptr.vmem [resolvable:$true] %s1256_s30 }
 0x170   : > { %s1258_s7 = sshll.u32 %s2731_s8, 4  ;;  %s1259_s7 = int_to_ptr.hbm [resolvable:$true] %s1258_s7 }
 0x171   : > { %1820 = dma.vmem_to_hbm [thread:$0]  (%p1844_p3), %s1257_s30, 1024, %s1259_s7, [#allocation13], %s2199_s13, %s2199_s13, %s2200_s14  }
 0x172   : > { %2158 = dma.done.wait (%p1844_p3), [#allocation5], 1024  }
 0x173   : > { %2160 = vsyncadd (%p1844_p3), [#allocation5], 4294966272 }
 0x174   : > { %2162 = dma.done.wait (%p1844_p3), [#allocation13], 1024  }
 0x175   : > { %2164 = vsyncadd (%p1844_p3), [#allocation13], 4294966272 }
 0x176 PF: > { %s25_s23 = sadd.s32 1, %s2187_s23   ;;  %s2732_s10 = sld [smem:[#allocation20_spill]] }
 0x177   : > { %p22_p4 = scmp.ge.s32.totalorder %s25_s23, 4   ;;  %s2733_s18 = smov %s2171_s19 }
 0x178   : > { %s2734_s19 = smov %s2175_s20  ;;  %s2735_s20 = smov %s2315_s11 }
 0x179   : > { %s2736_s21 = smov %s2183_s22  ;;  %24 = sbr.rel (!%p22_p4) target bundleno = 14 (0xe), region = 114 }
 0x17c   : > { %s2737_s22 = smov %s2732_s10 }
 0x17e   :  { %1280 = vsyncpa [#allocation4], 1 }
 0x17f   :  { %1282 = vsyncpa [#allocation4 + $0x1], 1 }
 0x180   :  { %1283 = vsyncpa [#allocation7], 1 }
 0x181   :  { %1285 = vsyncpa [#allocation7 + $0x1], 1 }
 0x182   :  { %1286 = vsyncpa [#allocation10], 1 }
 0x183   :  { %1287 = vsyncpa [#allocation5], 1 }
 0x184   :  { %1289 = vsyncpa [#allocation5 + $0x1], 1 }
 0x185   :  { %1290 = vsyncpa [#allocation13], 1 }

</bundles_post_ra>
